<compile_context>
chip_gen: v7x
topology: tpu7x:2x2x1
jax: 0.10.0
libtpu: 0.0.40
codegen_flags: <defaults>
</compile_context>

<pallas_src>
import functools

import numpy as np
import jax
import jax.numpy as jnp
from jax.experimental import pallas as pl
from jax.experimental.pallas import tpu as pltpu


# ----------------------------------------------------------------------------
# Model config (categorical_distribution=False, downsample=False, norm_type='BN')
# ----------------------------------------------------------------------------
OBS_SHAPE = (4, 8, 8)          # (C, H, W)
ACTION_SPACE = 6
NUM_RES_BLOCKS = 1             # per network (representation AND prediction)
NUM_CHANNELS = 16
VALUE_HEAD_CH = 4
POLICY_HEAD_CH = 4
HEAD_CH = VALUE_HEAD_CH + POLICY_HEAD_CH
HEAD_HIDDEN = 32
VALUE_SUPPORT = 1              # categorical_distribution=False
BN_EPS = 1e-5
LN_EPS = 1e-5
OUT_PAD = 128                  # lane-dense combined (value | policy) output slab
BT = 8                         # images per grid step (BT * HW = 512 rows per block)
MXU_DTYPE = jnp.bfloat16       # conv matmul operand dtype (accumulation stays f32)

_OFFSETS = tuple((dy, dx) for dy in (-1, 0, 1) for dx in (-1, 0, 1))
_IDENTITY_TAP = 4              # (dy, dx) == (0, 0)


# ----------------------------------------------------------------------------
# pltpu.roll direction probe (makes the spatial-shift code convention-proof)
# ----------------------------------------------------------------------------

@functools.lru_cache(maxsize=1)
def _roll_moves_to_higher_index() -> bool:
    """True iff pltpu.roll(x, s, axis) == jnp.roll(x, s, axis) for positive s."""
    def k(x_ref, o_ref):
        o_ref[...] = pltpu.roll(x_ref[...], 1, 0)

    x = jnp.arange(8 * 128, dtype=jnp.float32).reshape(8, 128)
    vmem = pl.BlockSpec(memory_space=pltpu.MemorySpace.VMEM)
    out = pl.pallas_call(
        k, out_shape=jax.ShapeDtypeStruct((8, 128), jnp.float32),
        in_specs=[vmem], out_specs=vmem)(x)
    out = np.asarray(jax.device_get(out))
    xn = np.asarray(x)
    if np.array_equal(out, np.roll(xn, 1, axis=0)):
        return True
    if np.array_equal(out, np.roll(xn, -1, axis=0)):
        return False
    raise AssertionError("unexpected pltpu.roll semantics")


# ----------------------------------------------------------------------------
# Fused forward kernel
# ----------------------------------------------------------------------------

def make_fused_kernel(n_blocks, bt, H, W, roll_to_higher):
    HW = H * W
    rows = bt * HW
    hid2 = 2 * HEAD_HIDDEN

    def shift_rows(y, d):
        # Returns z with z[r] = y[(r + d) % rows]  (flattened-row neighbour at offset d).
        if d == 0:
            return y
        amt = (-d) % rows if roll_to_higher else d % rows
        return pltpu.roll(y, amt, 0)

    def kernel(*refs):
        x_ref = refs[0]
        rep_w, rep_sh = refs[1], refs[2]
        blk = refs[3:3 + 4 * n_blocks]
        (head_w, head_sh, w1t, b1c, g_v, bt_v, g_p, bt_p,
         w2v, w2p, b2c) = refs[3 + 4 * n_blocks:-1]
        o_ref = refs[-1]

        # Per-tap zero-padding boundary masks (hoisted; pure iota/compare, VPU-only).
        ridx = jax.lax.broadcasted_iota(jnp.int32, (rows, 1), 0)
        hh = (ridx % HW) // W
        ww = ridx % W
        masks = []
        for dy, dx in _OFFSETS:
            ok = ((hh + dy) >= 0) & ((hh + dy) < H) & ((ww + dx) >= 0) & ((ww + dx) < W)
            masks.append(ok.astype(jnp.float32))

        def conv3x3(x, w_ref, sh_ref, residual=None):
            # x: (rows, Cin) f32.  w_ref: (Cin, 9*Cout) bf16, tap-major columns (BN scale
            # folded in).  One wide bf16 MXU matmul; taps recombined with XLU row-rolls
            # + VPU boundary masks (zero-padded 3x3 conv).
            cout = w_ref.shape[1] // 9
            y = jnp.dot(x.astype(MXU_DTYPE), w_ref[...],
                        preferred_element_type=jnp.float32)          # (rows, 9*Cout)
            acc = y[:, _IDENTITY_TAP * cout:(_IDENTITY_TAP + 1) * cout]
            for t, (dy, dx) in enumerate(_OFFSETS):
                if t == _IDENTITY_TAP:
                    continue
                d = dy * W + dx
                yt = shift_rows(y[:, t * cout:(t + 1) * cout], d)
                acc = acc + yt * masks[t]
            acc = acc + sh_ref[...]
            if residual is not None:
                acc = acc + residual
            return jnp.maximum(acc, 0.0)

        # Representation conv + (representation & prediction) res-blocks.
        x = conv3x3(x_ref[...], rep_w, rep_sh)
        for i in range(n_blocks):
            w1, s1, w2, s2 = blk[4 * i:4 * i + 4]
            y = conv3x3(x, w1, s1)
            x = conv3x3(y, w2, s2, residual=x)      # relu(conv + BN + identity)

        # Fused 1x1 value|policy head conv + BN + ReLU.
        a = jnp.maximum(
            jnp.dot(x.astype(MXU_DTYPE), head_w[...],
                    preferred_element_type=jnp.float32) + head_sh[...], 0.0)  # (rows, 8)

        # First MLP linear of both heads, directly from the (rows, 8) layout:
        #   hid[b, j] = sum_{s, c} a[b*HW + s, c] * W1[(c, s), j]
        # done as channel-broadcast accumulate (VPU) + block-selection matmul (MXU),
        # i.e. no sublane->lane reshape of the activations.
        q = a[:, 0:1] * w1t[0]
        for c in range(1, HEAD_CH):
            q = q + a[:, c:c + 1] * w1t[c]           # (rows, 64)
        b_id = jax.lax.broadcasted_iota(jnp.int32, (bt, rows), 0)
        r_id = jax.lax.broadcasted_iota(jnp.int32, (bt, rows), 1)
        sel = (b_id == r_id // HW).astype(jnp.float32)
        hid = jnp.dot(sel, q, preferred_element_type=jnp.float32) + b1c[...]  # (bt, 64)

        def ln_relu(h, g_ref, beta_ref):
            mu = jnp.mean(h, axis=-1, keepdims=True)
            var = jnp.mean(jnp.square(h - mu), axis=-1, keepdims=True)
            hn = (h - mu) * jax.lax.rsqrt(var + LN_EPS) * g_ref[...] + beta_ref[...]
            return jnp.maximum(hn, 0.0)

        hv = ln_relu(hid[:, :HEAD_HIDDEN], g_v, bt_v)
        hp = ln_relu(hid[:, HEAD_HIDDEN:], g_p, bt_p)

        # Combined, lane-padded final linears (accumulated, no concat):
        #   col 0 = value, cols 1..ACTION_SPACE = policy logits.
        o_ref[...] = (jnp.dot(hv, w2v[...], preferred_element_type=jnp.float32)
                      + jnp.dot(hp, w2p[...], preferred_element_type=jnp.float32)
                      + b2c[...])

    return kernel


def alphazero_forward(state_nchw, params, roll_to_higher):
    obs_c, H, W = OBS_SHAPE
    HW = H * W
    B = state_nchw.shape[0]
    Bp = ((B + BT - 1) // BT) * BT
    n_blocks = 2 * NUM_RES_BLOCKS

    # One boundary relayout NCHW -> (B*H*W, C); everything downstream stays in VMEM.
    x = jnp.transpose(state_nchw, (0, 2, 3, 1)).astype(jnp.float32)
    if Bp != B:
        x = jnp.pad(x, ((0, Bp - B), (0, 0), (0, 0), (0, 0)))
    x2d = x.reshape(Bp * HW, obs_c)

    # First-MLP-linear weights tiled over the batch tile (so the kernel stays purely 2D).
    w1t = jnp.tile(params["w1h"], (1, BT, 1))        # (8, BT*HW, 64)

    args = [x2d, params["rep_w"], params["rep_sh"]]
    for rb in params["resblocks"]:
        args += [rb["w1"], rb["sh1"], rb["w2"], rb["sh2"]]
    args += [params["head_w"], params["head_sh"], w1t, params["b1c"],
             params["g_v"], params["bt_v"], params["g_p"], params["bt_p"],
             params["w2v"], params["w2p"], params["b2c"]]

    def bcast_spec(a):
        zeros = (0,) * a.ndim
        return pl.BlockSpec(a.shape, lambda b, z=zeros: z)

    in_specs = [pl.BlockSpec((BT * HW, obs_c), lambda b: (b, 0))]
    in_specs += [bcast_spec(a) for a in args[1:]]

    out = pl.pallas_call(
        make_fused_kernel(n_blocks, BT, H, W, roll_to_higher),
        out_shape=jax.ShapeDtypeStruct((Bp, OUT_PAD), jnp.float32),
        grid=(Bp // BT,),
        in_specs=in_specs,
        out_specs=pl.BlockSpec((BT, OUT_PAD), lambda b: (b, 0)),
        compiler_params=pltpu.CompilerParams(
            dimension_semantics=("parallel",)),      # shard batch tiles across TCs on v7x
    )(*args)

    value = out[:B, :VALUE_SUPPORT]
    logit = out[:B, VALUE_SUPPORT:VALUE_SUPPORT + ACTION_SPACE]
    return logit, value


# ----------------------------------------------------------------------------
# Parameter init (deterministic) with BN folding / weight re-layout
# ----------------------------------------------------------------------------

def init_params(key):
    keys = iter(jax.random.split(key, 128))

    def w(shape, s=0.1):
        return jax.random.normal(next(keys), shape, jnp.float32) * s

    def bn(c):
        gamma = 1.0 + 0.1 * jax.random.normal(next(keys), (c,), jnp.float32)
        beta = 0.1 * jax.random.normal(next(keys), (c,), jnp.float32)
        mean = 0.1 * jax.random.normal(next(keys), (c,), jnp.float32)
        var = 1.0 + 0.1 * jnp.abs(jax.random.normal(next(keys), (c,), jnp.float32))
        return gamma, beta, mean, var

    def fold(gamma, beta, mean, var, conv_bias=None):
        scale = gamma / jnp.sqrt(var + BN_EPS)
        if conv_bias is None:
            shift = beta - mean * scale
        else:
            shift = beta + (conv_bias - mean) * scale
        return scale, shift

    def conv3x3_folded(cin, cout):
        # (9, cin, cout) taps (dy-major / dx-minor); BN scale folded into the columns,
        # then flattened tap-major to (cin, 9*cout) bf16 for the single wide MXU matmul.
        w9 = w((9, cin, cout))
        scale, shift = fold(*bn(cout))
        w9 = w9 * scale[None, None, :]
        wcat = jnp.transpose(w9, (1, 0, 2)).reshape(cin, 9 * cout).astype(MXU_DTYPE)
        return wcat, shift[None, :]

    obs_c, H, W = OBS_SHAPE
    HW = H * W
    p = {}
    p["rep_w"], p["rep_sh"] = conv3x3_folded(obs_c, NUM_CHANNELS)
    p["resblocks"] = []
    for _ in range(2 * NUM_RES_BLOCKS):              # representation + prediction blocks
        w1, sh1 = conv3x3_folded(NUM_CHANNELS, NUM_CHANNELS)
        w2, sh2 = conv3x3_folded(NUM_CHANNELS, NUM_CHANNELS)
        p["resblocks"].append({"w1": w1, "sh1": sh1, "w2": w2, "sh2": sh2})

    # 1x1 value/policy head convs (bias=True); conv bias + BN folded, heads fused along N.
    def conv1x1_folded(cin, cout):
        wt, bias = w((cin, cout)), w((cout,))
        scale, shift = fold(*bn(cout), conv_bias=bias)
        return wt * scale[None, :], shift[None, :]

    vw, vsh = conv1x1_folded(NUM_CHANNELS, VALUE_HEAD_CH)
    pw, psh = conv1x1_folded(NUM_CHANNELS, POLICY_HEAD_CH)
    p["head_w"] = jnp.concatenate([vw, pw], axis=1).astype(MXU_DTYPE)   # (16, 8)
    p["head_sh"] = jnp.concatenate([vsh, psh], axis=1)                  # (1, 8)

    # MLP heads (Linear -> LN -> ReLU -> Linear); first-linear rows are in the torch
    # CHW-flatten order (index c*HW + s), stored as (channel, spatial, hidden) so the
    # kernel never has to materialize the flatten.
    # NOTE: random (non-zero) init of the last layer is used instead of
    # last_linear_layer_init_zero to keep the test output non-trivial.
    def mlp_head(ch, out_dim):
        return {
            "w1": w((ch * HW, HEAD_HIDDEN)),
            "b1": w((1, HEAD_HIDDEN)),
            "g": 1.0 + 0.1 * jax.random.normal(next(keys), (1, HEAD_HIDDEN), jnp.float32),
            "beta": w((1, HEAD_HIDDEN)),
            "w2": w((HEAD_HIDDEN, out_dim)),
            "b2": w((1, out_dim)),
        }

    fv = mlp_head(VALUE_HEAD_CH, VALUE_SUPPORT)
    fp = mlp_head(POLICY_HEAD_CH, ACTION_SPACE)

    hid2 = 2 * HEAD_HIDDEN
    w1h = jnp.zeros((HEAD_CH, HW, hid2), jnp.float32)
    w1h = w1h.at[:VALUE_HEAD_CH, :, :HEAD_HIDDEN].set(
        fv["w1"].reshape(VALUE_HEAD_CH, HW, HEAD_HIDDEN))
    w1h = w1h.at[VALUE_HEAD_CH:, :, HEAD_HIDDEN:].set(
        fp["w1"].reshape(POLICY_HEAD_CH, HW, HEAD_HIDDEN))
    p["w1h"] = w1h                                                      # (8, HW, 64)
    p["b1c"] = jnp.concatenate([fv["b1"], fp["b1"]], axis=1)            # (1, 64)
    p["g_v"], p["bt_v"] = fv["g"], fv["beta"]
    p["g_p"], p["bt_p"] = fp["g"], fp["beta"]

    # Combined, lane-padded final linears: col 0 = value, cols 1..A = policy logits.
    assert VALUE_SUPPORT + ACTION_SPACE <= OUT_PAD
    w2v = jnp.zeros((HEAD_HIDDEN, OUT_PAD), jnp.float32)
    w2v = w2v.at[:, :VALUE_SUPPORT].set(fv["w2"])
    w2p = jnp.zeros((HEAD_HIDDEN, OUT_PAD), jnp.float32)
    w2p = w2p.at[:, VALUE_SUPPORT:VALUE_SUPPORT + ACTION_SPACE].set(fp["w2"])
    b2c = jnp.zeros((1, OUT_PAD), jnp.float32)
    b2c = b2c.at[:, :VALUE_SUPPORT].set(fv["b2"])
    b2c = b2c.at[:, VALUE_SUPPORT:VALUE_SUPPORT + ACTION_SPACE].set(fp["b2"])
    p["w2v"], p["w2p"], p["b2c"] = w2v, w2p, b2c
    return p


# ----------------------------------------------------------------------------
# Pure-JAX reference (same folded parameters, same bf16-at-the-dot convention)
# ----------------------------------------------------------------------------

def _ref_conv3x3(x, wcat, sh, residual=None):
    B, H, W, cin = x.shape
    cout = wcat.shape[1] // 9
    w9 = jnp.transpose(wcat.reshape(cin, 9, cout), (1, 0, 2))
    xp = jnp.pad(x, ((0, 0), (1, 1), (1, 1), (0, 0)))
    acc = sh.reshape(1, 1, 1, -1)
    t = 0
    for ky in range(3):
        for kx in range(3):
            acc = acc + jnp.einsum(
                "bhwc,co->bhwo",
                xp[:, ky:ky + H, kx:kx + W, :].astype(MXU_DTYPE), w9[t],
                preferred_element_type=jnp.float32)
            t += 1
    if residual is not None:
        acc = acc + residual
    return jnp.maximum(acc, 0.0)


def alphazero_forward_ref(state_nchw, params):
    B = state_nchw.shape[0]
    x = jnp.transpose(state_nchw, (0, 2, 3, 1)).astype(jnp.float32)
    x = _ref_conv3x3(x, params["rep_w"], params["rep_sh"])
    for rb in params["resblocks"]:
        y = _ref_conv3x3(x, rb["w1"], rb["sh1"])
        x = _ref_conv3x3(y, rb["w2"], rb["sh2"], residual=x)
    h = jnp.maximum(
        jnp.einsum("bhwc,co->bhwo", x.astype(MXU_DTYPE), params["head_w"],
                   preferred_element_type=jnp.float32)
        + params["head_sh"].reshape(1, 1, 1, -1), 0.0)

    # torch-style CHW flatten of each head's channels.
    v_flat = jnp.transpose(h[..., :VALUE_HEAD_CH], (0, 3, 1, 2)).reshape(B, -1)
    p_flat = jnp.transpose(h[..., VALUE_HEAD_CH:], (0, 3, 1, 2)).reshape(B, -1)

    w1v = params["w1h"][:VALUE_HEAD_CH, :, :HEAD_HIDDEN].reshape(-1, HEAD_HIDDEN)
    w1p = params["w1h"][VALUE_HEAD_CH:, :, HEAD_HIDDEN:].reshape(-1, HEAD_HIDDEN)
    b1v = params["b1c"][:, :HEAD_HIDDEN]
    b1p = params["b1c"][:, HEAD_HIDDEN:]

    def head(z, w1, b1, g, beta, w2, b2):
        hh = z @ w1 + b1
        mu = hh.mean(-1, keepdims=True)
        var = jnp.square(hh - mu).mean(-1, keepdims=True)
        hn = jnp.maximum((hh - mu) * jax.lax.rsqrt(var + LN_EPS) * g + beta, 0.0)
        return hn @ w2 + b2

    value = head(v_flat, w1v, b1v, params["g_v"], params["bt_v"],
                 params["w2v"][:, :VALUE_SUPPORT], params["b2c"][:, :VALUE_SUPPORT])
    logit = head(p_flat, w1p, b1p, params["g_p"], params["bt_p"],
                 params["w2p"][:, VALUE_SUPPORT:VALUE_SUPPORT + ACTION_SPACE],
                 params["b2c"][:, VALUE_SUPPORT:VALUE_SUPPORT + ACTION_SPACE])
    return logit, value


# ----------------------------------------------------------------------------

if __name__ == "__main__":
    key = jax.random.PRNGKey(0)
    pkey, xkey = jax.random.split(key)
    params = init_params(pkey)

    roll_to_higher = _roll_moves_to_higher_index()

    B = 2
    state = jax.random.normal(xkey, (B, *OBS_SHAPE), jnp.float32)   # (2, 4, 8, 8) NCHW

    fwd = jax.jit(lambda s: alphazero_forward(s, params, roll_to_higher))
    logit, value = fwd(state)
    jax.block_until_ready((logit, value))

    assert logit.shape == (B, ACTION_SPACE), logit.shape
    assert value.shape == (B, VALUE_SUPPORT), value.shape
    assert bool(jnp.all(jnp.isfinite(logit))) and bool(jnp.all(jnp.isfinite(value)))

    # Cross-check against a pure-JAX reference of the same folded model.  Both paths use
    # bf16 MXU operands with f32 accumulation, so the tolerance is above pure-f32 levels.
    ref_logit, ref_value = jax.jit(lambda s: alphazero_forward_ref(s, params))(state)
    assert bool(jnp.allclose(logit, ref_logit, atol=2e-2, rtol=2e-2)), (
        float(jnp.max(jnp.abs(logit - ref_logit))))
    assert bool(jnp.allclose(value, ref_value, atol=2e-2, rtol=2e-2)), (
        float(jnp.max(jnp.abs(value - ref_value))))

    print("KERNEL_OK")
</pallas_src>

<mosaic_0001>
module attributes {stable_mosaic.version = 11 : i64} {
  func.func @k(%arg0: memref<8x128xf32, #tpu.memory_space<vmem>>, %arg1: memref<8x128xf32, #tpu.memory_space<vmem>>) attributes {dimension_semantics = [], scalar_prefetch = 0 : i64, scratch_operands = 0 : i64, tpu.core_type = #tpu.core_type<tc>} {
    %c0 = arith.constant 0 : index
    %c0_0 = arith.constant 0 : index
    %0 = vector.load %arg0[%c0, %c0_0] : memref<8x128xf32, #tpu.memory_space<vmem>>, vector<8x128xf32>
    %c1_i32 = arith.constant 1 : i32
    %1 = tpu.dynamic_rotate %0 by %c1_i32 dim 0 : vector<8x128xf32>, i32 -> vector<8x128xf32>
    %c0_1 = arith.constant 0 : index
    %c0_2 = arith.constant 0 : index
    %2 = vector.load %arg1[%c0_1, %c0_2] : memref<8x128xf32, #tpu.memory_space<vmem>>, vector<8x128xf32>
    tpu.vector_store %arg1[%c0_1, %c0_2], %1 {strides = array<i32>} : memref<8x128xf32, #tpu.memory_space<vmem>>, vector<8x128xf32>,
    return
  }
}

</mosaic_0001>

<bundles_post_ra>
// kernel: tpu_custom_call.1
= control target key start
LH: loop header
LB: loop body
LE: loop exit
PB: predicated region body
PF: predicated region fallthrough
CT: control target
= control target key end

     0   :  { %6 = vsyncpa [#allocation3], 0  ;;  %s125_s0 = inlined_call_operand.hbm [shape: f32[8,128], index: 0, kind: input, shape index: {}]   ;;  %s126_s1 = inlined_call_operand.hbm [shape: f32[8,128], index: 1, kind: output, shape index: {}]  }
   0x1   :  { %7 = vsyncpa [#allocation4], 0  ;;  %s89_s6 = smov [#allocation2]   ;;  %s41_s10 = scalar_lea.hbm %s125_s0, 128 }
   0x2   :  { %s14_s7 = sshll.u32 %s89_s6, 4  ;;  %p42_p0 = scmp.ne.s32.totalorder %s125_s0, %s41_s10  ;;  %s15_s7 = int_to_ptr.vmem [resolvable:$true] %s14_s7 }
   0x3   :  { %p45_p1 = scmp.lt.u32.totalorder %s41_s10, %s125_s0 }
   0x5   :  { %p47_p2 = pnand %p45_p1, %p42_p0 }
   0x7   :  { %50 = shalt.err (!%p47_p2)
}
   0x8   :  { %s51_s15 = scalar_lea.vmem %s15_s7, 128  ;;  %p56_p4 = scmp.lt.s32.totalorder %s15_s7, %s15_s7 }
   0x9   :  { %p52_p3 = scmp.ne.s32.totalorder %s15_s7, %s51_s15  ;;  %p57_p5 = scmp.lt.s32.totalorder %s51_s15, %s51_s15 }
   0xb   :  { %p58_p6 = por %p57_p5, %p56_p4 }
   0xd   :  { %p59_p7 = pnand %p58_p6, %p52_p3 }
   0xf   :  { %62 = shalt.err (!%p59_p7)
}
  0x10   :  { %17 = dma.hbm_to_vmem [thread:$0]  %s125_s0, 128, %s15_s7, [#allocation3]  }
  0x11   :  { %85 = dma.done.wait [#allocation3], 128  }
  0x12   :  { %86 = vsyncadd [#allocation3], 4294967168  ;;  %s90_s18 = smov [#allocation5]   ;;  %v21_v0 = vld [vmem:[#allocation2] sm:$0xff] }
  0x13   :  { %s30_s19 = sshll.u32 %s90_s18, 4  ;;  %v22_v1 = vrot.slane %v21_v0, 7  ;;  %s31_s19 = int_to_ptr.vmem [resolvable:$true] %s30_s19 }
  0x14   :  { %s63_s20 = scalar_lea.vmem %s31_s19, 128  ;;  %p68_p9 = scmp.lt.s32.totalorder %s31_s19, %s31_s19 }
  0x15   :  { %23 = vst [vmem:[#allocation5] sm:$0xff] %v22_v1  ;;  %p64_p8 = scmp.ne.s32.totalorder %s31_s19, %s63_s20  ;;  %p69_p10 = scmp.lt.s32.totalorder %s63_s20, %s63_s20 }
  0x17   :  { %p70_p11 = por %p69_p10, %p68_p9 }
  0x19   :  { %p71_p12 = pnand %p70_p11, %p64_p8 }
  0x1b   :  { %74 = shalt.err (!%p71_p12)
}
  0x1c   :  { %s75_s23 = scalar_lea.hbm %s126_s1, 128 }
  0x1d   :  { %p76_p13 = scmp.ne.s32.totalorder %s126_s1, %s75_s23  ;;  %p79_p0 = scmp.lt.u32.totalorder %s75_s23, %s126_s1 }
  0x1f   :  { %p81_p1 = pnand %p79_p0, %p76_p13 }
  0x21   :  { %84 = shalt.err (!%p81_p1)
}
  0x22   :  { %33 = dma.vmem_to_hbm [thread:$0]  %s31_s19, 128, %s126_s1, [#allocation4]  }
  0x23   :  { %87 = dma.done.wait [#allocation4], 128  }
  0x24   :  { %88 = vsyncadd [#allocation4], 4294967168 }
  0x25   :  { %37 = vsyncpa [#allocation3], 1 }
  0x26   :  { %38 = vsyncpa [#allocation4], 1 }

</bundles_post_ra>
